<compile_context>
chip_gen: v5e
topology: v5e:2x2
jax: 0.10.0
libtpu: 0.0.40
codegen_flags: <defaults>
</compile_context>

<pallas_src>
import functools

import jax
import jax.numpy as jnp
from jax.experimental import pallas as pl
from jax.experimental.pallas import tpu as pltpu


def _round_up(x, m):
    return (x + m - 1) // m * m


def _cdiv(a, b):
    return (a + b - 1) // b


# ---------------------------------------------------------------------------
# Kernels.  One fused [TM, D] @ [D, 2C] MXU matmul per grid step; the four
# projections are carved out with static lane slices and stored as separate,
# exactly-sized outputs.  W / b column layout:
#   [ mean(Zz) | mean2(Zy) | logvar(Zz) | logvar2(Zy) ]
# ---------------------------------------------------------------------------

def _gfl_kernel_nosample(Zz, Zy, x_ref, m_ref, w_ref, b_ref,
                         mean_ref, logvar_ref, mean2_ref, logvar2_ref):
    C = Zz + Zy
    x = x_ref[...].astype(w_ref.dtype)          # bf16 (or f32) MXU operand
    m = m_ref[...]                              # (TM, 1), broadcasts over lanes
    proj = (jnp.dot(x, w_ref[...], preferred_element_type=jnp.float32)
            + b_ref[...]) * m                   # (TM, 2C), masked
    mean_ref[...] = proj[:, 0:Zz]
    mean2_ref[...] = proj[:, Zz:C]
    logvar_ref[...] = proj[:, C:C + Zz]
    logvar2_ref[...] = proj[:, C + Zz:2 * C]


def _gfl_kernel_sample(Zz, Zy, x_ref, m_ref, w_ref, b_ref, ez_ref, ey_ref,
                       mean_ref, logvar_ref, mean2_ref, logvar2_ref,
                       z_ref, y_ref):
    C = Zz + Zy
    x = x_ref[...].astype(w_ref.dtype)
    m = m_ref[...]
    proj = (jnp.dot(x, w_ref[...], preferred_element_type=jnp.float32)
            + b_ref[...]) * m
    mean = proj[:, 0:Zz]
    mean2 = proj[:, Zz:C]
    logvar = proj[:, C:C + Zz]
    logvar2 = proj[:, C + Zz:2 * C]
    mean_ref[...] = mean
    mean2_ref[...] = mean2
    logvar_ref[...] = logvar
    logvar2_ref[...] = logvar2
    # TODO(synk): `gaussian` is not defined in the reference snippet; this uses
    # the conventional reparameterized sampler mean + exp(0.5*logvar) * eps.
    z_ref[...] = (mean + jnp.exp(0.5 * logvar) * ez_ref[...]) * m
    y_ref[...] = (mean2 + jnp.exp(0.5 * logvar2) * ey_ref[...]) * m


# ---------------------------------------------------------------------------
# Parameter packing (hoisted out of the per-call path -- call once when the
# parameters are created/updated and reuse the packed slab every forward).
# ---------------------------------------------------------------------------

def pack_params(params, compute_dtype=jnp.bfloat16):
    """Pack the 4 Linear layers into one [D, 2*(Zz+Zy)] weight slab + bias row."""
    Zz = int(params["w_mean"].shape[1])
    Zy = int(params["w_mean2"].shape[1])
    W = jnp.concatenate(
        [params["w_mean"], params["w_mean2"],
         params["w_logvar"], params["w_logvar2"]], axis=1).astype(compute_dtype)
    b = jnp.concatenate(
        [params["b_mean"], params["b_mean2"],
         params["b_logvar"], params["b_logvar2"]]).reshape(1, -1).astype(jnp.float32)
    return {"W": W, "b": b, "Zz": Zz, "Zy": Zy}


def _pick_tile_and_vmem(N, D, C, x_bytes, w_bytes, sample, row_tile):
    """Pick a balanced row tile (>=2 grid steps) and a footprint-based VMEM cap."""
    min_steps = 2 if N <= 64 else 4              # let v7x split across both TCs
    n_steps = max(min_steps, _cdiv(N, row_tile))
    tm = max(8, _round_up(_cdiv(N, n_steps), 8))

    # Budget: roughly half of physical VMEM (64 MiB on v7x, 128 MiB v5e/v6e).
    try:
        phys = pltpu.get_tpu_info().vmem_capacity_bytes
    except Exception:
        phys = 64 << 20
    budget = max(32 << 20, min(phys // 2, 96 << 20))

    fixed = 2 * (D * 2 * C * w_bytes + 2 * C * 4)      # W + bias (double-buffered)
    per_row = D * x_bytes + 4 + 2 * C * 4              # x + mask + 4 projection outs
    if sample:
        per_row += 2 * C * 4                           # eps_z/eps_y + z/y outputs
    per_row *= 2                                       # double buffering
    while tm > 8 and fixed + tm * per_row > budget:
        tm = max(8, _round_up(tm // 2, 8))
    vmem_bytes = min(budget, fixed + tm * per_row + (4 << 20))
    vmem_bytes = max(vmem_bytes, 16 << 20)
    return tm, int(vmem_bytes)


def gaussian_flat_layer_forward(inputs, mask, packed, eps_z=None, eps_y=None,
                                sample=False, row_tile=1024):
    """inputs: [B, L, D], mask: [B, L] (binary). Returns the torch 6-tuple."""
    B, L, D = inputs.shape
    Zz, Zy = packed["Zz"], packed["Zy"]
    C = Zz + Zy
    W, bv = packed["W"], packed["b"]
    N = B * L
    f32 = jnp.float32

    x = inputs.reshape(N, D)                     # no host-side padding / copy
    m = mask.reshape(N, 1).astype(f32)

    TM, vmem_bytes = _pick_tile_and_vmem(
        N, D, C, x.dtype.itemsize, W.dtype.itemsize, sample, row_tile)
    grid = (_cdiv(N, TM),)                       # ragged last block handled by Pallas

    row_spec = lambda cols: pl.BlockSpec((TM, cols), lambda i: (i, 0))
    full_spec = lambda r, c: pl.BlockSpec((r, c), lambda i: (0, 0))

    in_specs = [row_spec(D), row_spec(1), full_spec(D, 2 * C), full_spec(1, 2 * C)]
    args = [x, m, W, bv]

    out_shape = [jax.ShapeDtypeStruct((N, Zz), f32),    # mean
                 jax.ShapeDtypeStruct((N, Zz), f32),    # logvar
                 jax.ShapeDtypeStruct((N, Zy), f32),    # mean2
                 jax.ShapeDtypeStruct((N, Zy), f32)]    # logvar2
    out_specs = [row_spec(Zz), row_spec(Zz), row_spec(Zy), row_spec(Zy)]

    if sample:
        in_specs += [row_spec(Zz), row_spec(Zy)]
        args += [eps_z.reshape(N, Zz).astype(f32),
                 eps_y.reshape(N, Zy).astype(f32)]
        out_shape += [jax.ShapeDtypeStruct((N, Zz), f32),   # z
                      jax.ShapeDtypeStruct((N, Zy), f32)]   # y
        out_specs += [row_spec(Zz), row_spec(Zy)]
        kernel = functools.partial(_gfl_kernel_sample, Zz, Zy)
    else:
        kernel = functools.partial(_gfl_kernel_nosample, Zz, Zy)

    outs = pl.pallas_call(
        kernel,
        out_shape=out_shape,
        grid_spec=pltpu.PrefetchScalarGridSpec(
            num_scalar_prefetch=0,
            grid=grid,
            in_specs=in_specs,
            out_specs=out_specs,
        ),
        compiler_params=pltpu.CompilerParams(
            dimension_semantics=("parallel",),
            vmem_limit_bytes=vmem_bytes,
        ),
    )(*args)

    if sample:
        mean_qs, logvar_qs, mean2_qs, logvar2_qs, z, y = outs
    else:
        mean_qs, logvar_qs, mean2_qs, logvar2_qs = outs
        # Binary {0,1} mask: mean_qs is already masked, so mean_qs*mask == mean_qs.
        z, y = mean_qs, mean2_qs

    rs = lambda a, k: a.reshape(B, L, k)
    return (rs(z, Zz), rs(y, Zy), rs(mean_qs, Zz), rs(logvar_qs, Zz),
            rs(mean2_qs, Zy), rs(logvar2_qs, Zy))


# ---------------------------------------------------------------------------
# Init / reference / self-test.
# ---------------------------------------------------------------------------

def init_params(key, input_size, latent_z_size, latent_y_size):
    """Deterministic synthetic init. Weights stored as [in, out]."""
    ks = jax.random.split(key, 8)
    bound = 1.0 / jnp.sqrt(input_size)
    u = lambda k, shape: jax.random.uniform(
        k, shape, jnp.float32, minval=-bound, maxval=bound)
    return {
        "w_mean": u(ks[0], (input_size, latent_z_size)),
        "b_mean": u(ks[1], (latent_z_size,)),
        "w_logvar": u(ks[2], (input_size, latent_z_size)),
        "b_logvar": u(ks[3], (latent_z_size,)),
        "w_mean2": u(ks[4], (input_size, latent_y_size)),
        "b_mean2": u(ks[5], (latent_y_size,)),
        "w_logvar2": u(ks[6], (input_size, latent_y_size)),
        "b_logvar2": u(ks[7], (latent_y_size,)),
    }


def _reference(inputs, mask, params, eps_z, eps_y, sample):
    m = mask[..., None]
    mean_q = (inputs @ params["w_mean"] + params["b_mean"]) * m
    logvar_q = (inputs @ params["w_logvar"] + params["b_logvar"]) * m
    mean2_q = (inputs @ params["w_mean2"] + params["b_mean2"]) * m
    logvar2_q = (inputs @ params["w_logvar2"] + params["b_logvar2"]) * m
    if sample:
        z = (mean_q + jnp.exp(0.5 * logvar_q) * eps_z) * m
        y = (mean2_q + jnp.exp(0.5 * logvar2_q) * eps_y) * m
    else:
        z = mean_q * m
        y = mean2_q * m
    return z, y, mean_q, logvar_q, mean2_q, logvar2_q


if __name__ == "__main__":
    def _check(B, L, D, Zz, Zy, compute_dtype, atol, rtol):
        key = jax.random.PRNGKey(0)
        k_in, _k_mask, k_par, k_ez, k_ey = jax.random.split(key, 5)
        inputs = jax.random.normal(k_in, (B, L, D), jnp.float32)
        # Binary mask: last 2 positions of the last batch element are padding.
        mask = jnp.ones((B, L), jnp.float32).at[-1, -2:].set(0.0)
        params = init_params(k_par, D, Zz, Zy)
        packed = pack_params(params, compute_dtype=compute_dtype)
        eps_z = jax.random.normal(k_ez, (B, L, Zz), jnp.float32)
        eps_y = jax.random.normal(k_ey, (B, L, Zy), jnp.float32)

        for sample in (False, True):
            outs = gaussian_flat_layer_forward(
                inputs, mask, packed,
                eps_z if sample else None, eps_y if sample else None,
                sample=sample)
            outs = jax.block_until_ready(outs)
            refs = _reference(inputs, mask, params, eps_z, eps_y, sample)
            for o, r in zip(outs, refs):
                assert o.shape == r.shape, (o.shape, r.shape)
                assert jnp.allclose(o, r, atol=atol, rtol=rtol), (
                    f"mismatch sample={sample} dtype={compute_dtype}")

    # f32 compute path: bit-faithful semantics, tight tolerance.
    _check(B=2, L=8, D=32, Zz=32, Zy=16, compute_dtype=jnp.float32,
           atol=1e-5, rtol=1e-5)
    # bf16 MXU path (default compute dtype): bf16-level tolerance.
    _check(B=2, L=8, D=32, Zz=32, Zy=16, compute_dtype=jnp.bfloat16,
           atol=8e-2, rtol=5e-2)
    # Ragged row count (N = 15 not a multiple of the row tile): exercises the
    # partial-last-block path now that host-side padding was removed.
    _check(B=3, L=5, D=32, Zz=32, Zy=16, compute_dtype=jnp.float32,
           atol=1e-5, rtol=1e-5)

    print("KERNEL_OK")
</pallas_src>

<mosaic_0001>
module attributes {stable_mosaic.version = 11 : i64} {
  func.func @_gfl_kernel_nosample(%arg0: i32, %arg1: memref<8x32xf32, #tpu.memory_space<vmem>>, %arg2: memref<8x1xf32, #tpu.memory_space<vmem>>, %arg3: memref<32x96xf32, #tpu.memory_space<vmem>>, %arg4: memref<1x96xf32, #tpu.memory_space<vmem>>, %arg5: memref<8x32xf32, #tpu.memory_space<vmem>>, %arg6: memref<8x32xf32, #tpu.memory_space<vmem>>, %arg7: memref<8x16xf32, #tpu.memory_space<vmem>>, %arg8: memref<8x16xf32, #tpu.memory_space<vmem>>) attributes {dimension_semantics = [#tpu.dimension_semantics<parallel>], iteration_bounds = array<i64: 2>, scalar_prefetch = 0 : i64, scratch_operands = 0 : i64, tpu.core_type = #tpu.core_type<tc>, window_params = [{transform_indices = @transform_0, window_bounds = array<i64: 8, 32>}, {transform_indices = @transform_1, window_bounds = array<i64: 8, 1>}, {pipeline_mode = #tpu.pipeline_mode<synchronous>, transform_indices = @transform_2, window_bounds = array<i64: 32, 96>}, {pipeline_mode = #tpu.pipeline_mode<synchronous>, transform_indices = @transform_3, window_bounds = array<i64: 1, 96>}, {transform_indices = @transform_4, window_bounds = array<i64: 8, 32>}, {transform_indices = @transform_5, window_bounds = array<i64: 8, 32>}, {transform_indices = @transform_6, window_bounds = array<i64: 8, 16>}, {transform_indices = @transform_7, window_bounds = array<i64: 8, 16>}]} {
    %c0 = arith.constant 0 : index
    %c0_0 = arith.constant 0 : index
    %0 = vector.load %arg1[%c0, %c0_0] : memref<8x32xf32, #tpu.memory_space<vmem>>, vector<8x32xf32>
    %c0_1 = arith.constant 0 : index
    %c0_2 = arith.constant 0 : index
    %1 = vector.load %arg2[%c0_1, %c0_2] : memref<8x1xf32, #tpu.memory_space<vmem>>, vector<8x1xf32>
    %c0_3 = arith.constant 0 : index
    %c0_4 = arith.constant 0 : index
    %2 = vector.load %arg3[%c0_3, %c0_4] : memref<32x96xf32, #tpu.memory_space<vmem>>, vector<32x96xf32>
    %cst = arith.constant dense<0.000000e+00> : vector<8x96xf32>
    %3 = tpu.matmul %0, %2, %cst {dimension_numbers = #tpu.dot_dimension_numbers<[1], [0], [0], [1], [0, 0, 1, 1], [], []>} : vector<8x32xf32>, vector<32x96xf32>, vector<8x96xf32> -> vector<8x96xf32>
    %c0_5 = arith.constant 0 : index
    %c0_6 = arith.constant 0 : index
    %4 = vector.load %arg4[%c0_5, %c0_6] : memref<1x96xf32, #tpu.memory_space<vmem>>, vector<1x96xf32>
    %5 = vector.broadcast %4 : vector<1x96xf32> to vector<8x96xf32>
    %6 = arith.addf %3, %5 : vector<8x96xf32>
    %7 = vector.broadcast %1 : vector<8x1xf32> to vector<8x96xf32>
    %8 = arith.mulf %6, %7 : vector<8x96xf32>
    %9 = vector.extract_strided_slice %8 {offsets = [0, 0], sizes = [8, 32], strides = [1, 1]} : vector<8x96xf32> to vector<8x32xf32>
    %c0_7 = arith.constant 0 : index
    %c0_8 = arith.constant 0 : index
    %10 = vector.load %arg5[%c0_7, %c0_8] : memref<8x32xf32, #tpu.memory_space<vmem>>, vector<8x32xf32>
    tpu.vector_store %arg5[%c0_7, %c0_8], %9 {strides = array<i32>} : memref<8x32xf32, #tpu.memory_space<vmem>>, vector<8x32xf32>,
    %11 = vector.extract_strided_slice %8 {offsets = [0, 32], sizes = [8, 16], strides = [1, 1]} : vector<8x96xf32> to vector<8x16xf32>
    %c0_9 = arith.constant 0 : index
    %c0_10 = arith.constant 0 : index
    %12 = vector.load %arg7[%c0_9, %c0_10] : memref<8x16xf32, #tpu.memory_space<vmem>>, vector<8x16xf32>
    tpu.vector_store %arg7[%c0_9, %c0_10], %11 {strides = array<i32>} : memref<8x16xf32, #tpu.memory_space<vmem>>, vector<8x16xf32>,
    %13 = vector.extract_strided_slice %8 {offsets = [0, 48], sizes = [8, 32], strides = [1, 1]} : vector<8x96xf32> to vector<8x32xf32>
    %c0_11 = arith.constant 0 : index
    %c0_12 = arith.constant 0 : index
    %14 = vector.load %arg6[%c0_11, %c0_12] : memref<8x32xf32, #tpu.memory_space<vmem>>, vector<8x32xf32>
    tpu.vector_store %arg6[%c0_11, %c0_12], %13 {strides = array<i32>} : memref<8x32xf32, #tpu.memory_space<vmem>>, vector<8x32xf32>,
    %15 = vector.extract_strided_slice %8 {offsets = [0, 80], sizes = [8, 16], strides = [1, 1]} : vector<8x96xf32> to vector<8x16xf32>
    %c0_13 = arith.constant 0 : index
    %c0_14 = arith.constant 0 : index
    %16 = vector.load %arg8[%c0_13, %c0_14] : memref<8x16xf32, #tpu.memory_space<vmem>>, vector<8x16xf32>
    tpu.vector_store %arg8[%c0_13, %c0_14], %15 {strides = array<i32>} : memref<8x16xf32, #tpu.memory_space<vmem>>, vector<8x16xf32>,
    return
  }
  func.func @transform_0(%arg0: i32) -> (i32, i32) {
    %c0_i32 = arith.constant 0 : i32
    %c0_i32_0 = arith.constant 0 : i32
    return %arg0, %c0_i32 : i32, i32
  }
  func.func @transform_1(%arg0: i32) -> (i32, i32) {
    %c0_i32 = arith.constant 0 : i32
    %c0_i32_0 = arith.constant 0 : i32
    return %arg0, %c0_i32 : i32, i32
  }
  func.func @transform_2(%arg0: i32) -> (i32, i32) {
    %c0_i32 = arith.constant 0 : i32
    %c0_i32_0 = arith.constant 0 : i32
    %c0_i32_1 = arith.constant 0 : i32
    return %c0_i32, %c0_i32_0 : i32, i32
  }
  func.func @transform_3(%arg0: i32) -> (i32, i32) {
    %c0_i32 = arith.constant 0 : i32
    %c0_i32_0 = arith.constant 0 : i32
    %c0_i32_1 = arith.constant 0 : i32
    return %c0_i32, %c0_i32_0 : i32, i32
  }
  func.func @transform_4(%arg0: i32) -> (i32, i32) {
    %c0_i32 = arith.constant 0 : i32
    %c0_i32_0 = arith.constant 0 : i32
    return %arg0, %c0_i32 : i32, i32
  }
  func.func @transform_5(%arg0: i32) -> (i32, i32) {
    %c0_i32 = arith.constant 0 : i32
    %c0_i32_0 = arith.constant 0 : i32
    return %arg0, %c0_i32 : i32, i32
  }
  func.func @transform_6(%arg0: i32) -> (i32, i32) {
    %c0_i32 = arith.constant 0 : i32
    %c0_i32_0 = arith.constant 0 : i32
    return %arg0, %c0_i32 : i32, i32
  }
  func.func @transform_7(%arg0: i32) -> (i32, i32) {
    %c0_i32 = arith.constant 0 : i32
    %c0_i32_0 = arith.constant 0 : i32
    return %arg0, %c0_i32 : i32, i32
  }
}

</mosaic_0001>

<bundles_post_ra>
// kernel: tpu_custom_call.1
= control target key start
LH: loop header
LB: loop body
LE: loop exit
PB: predicated region body
PF: predicated region fallthrough
CT: control target
= control target key end

     0   :  { %s1171_s0 = inlined_call_operand.vmem [shape: f32[16,32], index: 0, kind: input, shape index: {}]   ;;  %s1172_s1 = inlined_call_operand.vmem [shape: f32[16,1], index: 1, kind: input, shape index: {}]   ;;  %s1173_s2 = inlined_call_operand.hbm [shape: f32[32,96], index: 2, kind: input, shape index: {}]   ;;  %s1174_s3 = inlined_call_operand.vmem [shape: f32[1,96], index: 3, kind: input, shape index: {}]   ;;  %s1175_s4 = inlined_call_operand.hbm [shape: f32[16,32], index: 4, kind: output, shape index: {0}]   ;;  %s1176_s5 = inlined_call_operand.hbm [shape: f32[16,32], index: 5, kind: output, shape index: {1}]   ;;  %s1177_s6 = inlined_call_operand.hbm [shape: f32[16,16], index: 6, kind: output, shape index: {2}]   ;;  %s1178_s7 = inlined_call_operand.hbm [shape: f32[16,16], index: 7, kind: output, shape index: {3}]  }
   0x1   :  { %1180 = sst [smem:[#allocation15_spill]] %s1171_s0 }
   0x2   :  { %1181 = sst [smem:[#allocation16_spill]] %s1172_s1 }
   0x3   :  { %1182 = sst [smem:[#allocation17_spill]] %s1173_s2 }
   0x4   :  { %1183 = sst [smem:[#allocation18_spill]] %s1174_s3 }
   0x5   :  { %13 = vsyncpa [#allocation3], 0 }
   0x6   :  { %14 = vsyncpa [#allocation4], 0 }
   0x7   :  { %16 = vsyncpa [#allocation4 + $0x1], 0 }
   0x8   :  { %17 = vsyncpa [#allocation7], 0 }
   0x9   :  { %19 = vsyncpa [#allocation7 + $0x1], 0 }
   0xa   :  { %20 = vsyncpa [#allocation10], 0 }
   0xb   :  { %22 = vsyncpa [#allocation10 + $0x1], 0  ;;  %s976_s24 = smov 0   ;;  %s978_s25 = smov 0  }
   0xc   :  { %s980_s26 = smov 0   ;;  %s982_s27 = smov 0  }
   0xd LB: > { %s997_s28 = sadd.s32 4294967295, %s927_s27   ;;  %s1179_s29 = sadd.s32 4294967294, %s927_s27   ;;  %s927_s27 = sphi %s982_s27, %s1194_s27   ;;  %s923_s26 = sphi %s980_s26, %s1193_s26   ;;  %s919_s25 = sphi %s978_s25, %s1192_s25   ;;  %s915_s24 = sphi %s976_s24, %s1191_s24  }
   0xe   : > { %s1001_s30 = sadd.s32 1, %s927_s27   ;;  %s129_s8 = sadd.s32 1, %s923_s26 }
   0xf   : > { %s126_s9 = ssub.s32 %s927_s27, %s1001_s30  ;;  %p139_p0 = scmp.ne.s32.totalorder %s923_s26, %s919_s25 }
  0x10   : > { %p127_p1 = scmp.eq.s32.totalorder %s126_s9, 0  ;;  %p140_p2 = scmp.eq.s32.totalorder %s997_s28, 1 }
  0x11   : > { %p145_p3 = scmp.ne.s32.totalorder %s919_s25, %s915_s24  ;;  %p146_p4 = scmp.eq.s32.totalorder %s1179_s29, 1 }
  0x12   : > { %s1014_s10 = scalar_select %p127_p1, %s923_s26, %s129_s8  }
  0x13   : > { %p1016_p5 = por %p140_p2, %p139_p0  ;;  %p1020_p6 = por %p146_p4, %p145_p3 }
  0x14   : > { %p644_p7 = scmp.ge.s32.totalorder %s927_s27, 1  ;;  %p231_p8 = scmp.lt.s32.totalorder %s927_s27, 3 }
  0x15   : > { %p695_p9 = scmp.eq.s32.totalorder %s997_s28, 0  ;;  %s1186_s2 = sld [smem:[#allocation17_spill]] }
  0x16   : > { %p232_p10 = pnand %p644_p7, %p231_p8  ;;  %s929_s16 = smov [#allocation2]  }
  0x17   : > { %s244_s17 = sshll.u32 %s929_s16, 4  ;;  %s930_s18 = smov 128   ;;  %s245_s17 = int_to_ptr.vmem [resolvable:$true] %s244_s17 }
  0x18   : > { %p678_p11 = pneg %p232_p10  ;;  %s931_s19 = smov 8  }
  0x19   : > { %277 = sbr.rel (%p232_p10) target bundleno = 313 (0x139), region = 36 }
  0x1a   : > { %p679_p12 = pnand %p695_p9, %p678_p11 }
  0x1b   : > { %s242_s15 = sshll.u32 %s1186_s2, 4  ;;  %s243_s15 = int_to_ptr.hbm [resolvable:$true] %s242_s15 }
  0x1c   : > { %681 = dma.hbm_to_vmem [thread:$0]  (!%p679_p12), %s243_s15, 512, %s245_s17, [#allocation3], %s930_s18, %s930_s18, %s931_s19  }
  0x1e   : > { %898 = dma.done.wait (%p695_p9), [#allocation3], 512  }
  0x1f   : > { %900 = vsyncadd (%p695_p9), [#allocation3], 4294966784  ;;  %p328_p13 = scmp.lt.s32.totalorder %s997_s28, 1  ;;  %v932_v0 = vmov 0   ;;  %s1187_s1 = sld [smem:[#allocation16_spill]]  ;;  %v341_v1 = vld [vmem:[#allocation2 + $0x18] sm:$0xff] }
  0x20   : > { %737 = vset.pattern.permute.xlu0 %v932_v0  ;;  %v340_v2 = vld [vmem:[#allocation2 + $0x10] sm:$0xff]  ;;  %362 = vmatpush.msra.mxu0 %v341_v1  ;;  %v339_v4 = vld [vmem:[#allocation2 + $0x8] sm:$0xff]  ;;  %s1188_s0 = sld [smem:[#allocation15_spill]]  ;;  %v338_v5 = vld [vmem:[#allocation2] sm:$0xff]  ;;  %vm346_vm0 = vcmask 261120   ;;  %s1046_s15 = sand.u32 1, %s919_s25  }
  0x21   : > { %s329_s20 = scalar_select %p328_p13, %s997_s28, 1 }
  0x22   : > { %363 = vmatpush.msra.mxu0 %v340_v2  ;;  %s1189_s3 = sld [smem:[#allocation18_spill]]  ;;  %s1052_s18 = sshll.u32 %s1046_s15, 3 }
  0x23   : > { %s653_s21 = sshll.u32 %s329_s20, 3  ;;  %s1055_s19 = sshll.u32 %s997_s28, 3 }
  0x24   : > { %364 = vmatpush.msra.mxu0 %v339_v4  ;;  %s417_s22 = scalar_lea.hbm %s1175_s4, %s1055_s19  ;;  %s306_s23 = scalar_lea.vmem [#allocation5], %s1052_s18 }
  0x25   : > { %s335_s8 = scalar_lea.vmem %s1187_s1, %s653_s21  ;;  %s421_s9 = sshll.u32 %s417_s22, 4  ;;  %s422_s9 = int_to_ptr.hbm [resolvable:$true] %s421_s9 }
  0x26   : > { %v337_v3 = vld [vmem:[%s335_s8] sm:$0xff]  ;;  %s331_s14 = scalar_lea.vmem %s1188_s0, %s653_s21  ;;  %365 = vmatpush.msra.mxu0 %v338_v5  ;;  %s419_s8 = sshll.u32 %s306_s23, 4  ;;  %s420_s8 = int_to_ptr.vmem [resolvable:$true] %s419_s8 }
  0x27   : > { %372 = vperm.xlu0 %737, %v337_v3   ;;  %v336_v6 = vld [vmem:[%s331_s14] sm:$0xff]  ;;  %s933_s13 = smov 96   ;;  %s934_s14 = smov 80  }
  0x28   : > { %655 = vmatmul.msk.f32.vlgmr.msra.gmra.mxu0 %vm346_vm0, %v336_v6  ;;  %v738_v7 = vld [vmem:[%s1189_s3] ss:$0 sm:$0xff]  ;;  %s392_s16 = scalar_lea.sflag [#allocation4], %s1046_s15  ;;  %s783_s17 = sshra.s32 %s422_s9, 4  ;;  %s784_s17 = int_to_ptr.hbm [resolvable:$true] %s783_s17 }
  0x29   : > { %s785_s29 = scalar_lea.hbm %s784_s17, 8  ;;  %s789_s22 = scalar_lea.hbm %s1175_s4, 16 }
  0x2a   : > { %p786_p0 = scmp.ne.s32.totalorder %s784_s17, %s785_s29  ;;  %p790_p3 = scmp.lt.s32.totalorder %s784_s17, %s1175_s4 }
  0x2b   : > { %p791_p4 = scmp.lt.s32.totalorder %s789_s22, %s785_s29 }
  0x2c   : > { %p787_p1 = pnand %p786_p0, %p1016_p5 }
  0x2d   : > { %p792_p7 = por %p791_p4, %p790_p3 }
  0x2e   : > { %p788_p2 = pneg %p787_p1 }
  0x30   : > { %p793_p8 = pnand %p792_p7, %p788_p2 }
  0x99   : > { %v373_v9 = vpop.permute.xlu0 %372 }
  0xa5   : > { %v367_v8 = vpop.f32.mrf.mxu0 }
  0xa6   : > { %v368_v10 = vadd.f32 %v738_v7, %v367_v8 }
  0xa8   : > { %v375_v11 = vmul.f32 %v373_v9, %v368_v10 }
  0xaa   : > { %378 = vrot.lane.b32.xlu1 %v375_v11, %s933_s13  ;;  %383 = vrot.lane.b32.xlu0 %v375_v11, %s934_s14  ;;  %376 = vst.msk [vmem:[%s306_s23] sm:$0xff] %vm346_vm0, %v375_v11 }
  0xab   : > { %796 = shalt.err (!%p793_p8)
}
  0xac   : > { %670 = dma.vmem_to_hbm [thread:$0]  (%p1016_p5), %s420_s8, 128, %s422_s9, %s392_s16   ;;  %vm381_vm1 = vcmask 130048  }
  0xad   : > { %s935_s23 = smov 48   ;;  %s431_s0 = scalar_lea.hbm %s1176_s5, %s1055_s19 }
  0xae   : > { %s320_s1 = scalar_lea.vmem [#allocation8], %s1052_s18  ;;  %s445_s21 = scalar_lea.hbm %s1177_s6, %s1055_s19 }
  0xaf   : > { %s1079_s29 = sshll.u32 %s320_s1, 4  ;;  %s396_s22 = sand.u32 1, %s997_s28   ;;  %s448_s29 = int_to_ptr.vmem [resolvable:$true] %s1079_s29 }
  0xb0   : > { %s313_s2 = scalar_lea.vmem [#allocation6], %s1052_s18  ;;  %s1089_s8 = sshll.u32 %s431_s0, 4  ;;  %s436_s8 = int_to_ptr.hbm [resolvable:$true] %s1089_s8 }
  0xb1   : > { %s1087_s3 = sshll.u32 %s313_s2, 4  ;;  %s1091_s9 = sshll.u32 %s445_s21, 4  ;;  %s434_s3 = int_to_ptr.vmem [resolvable:$true] %s1087_s3  ;;  %s450_s9 = int_to_ptr.hbm [resolvable:$true] %s1091_s9 }
  0xb2   : > { %387 = vrot.lane.b32.xlu1 %v375_v11, %s935_s23  ;;  %s459_s13 = scalar_lea.hbm %s1178_s7, %s1055_s19  ;;  %s327_s28 = scalar_lea.vmem [#allocation9], %s1052_s18 }
  0xb3   : > { %s1106_s14 = sshll.u32 %s327_s28, 4  ;;  %s1108_s0 = sshll.u32 %s459_s13, 4  ;;  %s462_s14 = int_to_ptr.vmem [resolvable:$true] %s1106_s14  ;;  %s464_s0 = int_to_ptr.hbm [resolvable:$true] %s1108_s0 }
  0xb4   : > { %s397_s17 = scalar_lea.sflag [#allocation7], %s396_s22  ;;  %s811_s20 = sshra.s32 %s436_s8, 4  ;;  %s812_s20 = int_to_ptr.hbm [resolvable:$true] %s811_s20 }
  0xb5   : > { %s813_s19 = scalar_lea.hbm %s812_s20, 8  ;;  %s817_s16 = scalar_lea.hbm %s1176_s5, 16 }
  0xb6   : > { %p814_p9 = scmp.ne.s32.totalorder %s812_s20, %s813_s19  ;;  %p818_p12 = scmp.lt.s32.totalorder %s812_s20, %s1176_s5 }
  0xb7   : > { %p819_p13 = scmp.lt.s32.totalorder %s817_s16, %s813_s19 }
  0xb8   : > { %p815_p10 = pnand %p814_p9, %p1016_p5 }
  0xb9   : > { %p820_p0 = por %p819_p13, %p818_p12 }
  0xba   : > { %p816_p11 = pneg %p815_p10 }
  0xbc   : > { %p821_p1 = pnand %p820_p0, %p816_p11 }
 0x11c   : > { %v379_v12 = vpop.permute.xlu1 %378  ;;  %v384_v13 = vpop.permute.xlu0 %383 }
 0x11d   : > { %382 = vst.msk [vmem:[%s320_s1] sm:$0xff] %vm381_vm1, %v379_v12 }
 0x11e   : > { %386 = vst.msk [vmem:[%s313_s2] sm:$0xff] %vm346_vm0, %v384_v13 }
 0x11f   : > { %824 = shalt.err (!%p821_p1)
}
 0x120   : > { %671 = dma.vmem_to_hbm [thread:$0]  (%p1016_p5), %s434_s3, 128, %s436_s8, %s397_s17  }
 0x121   : > { %s839_s22 = sshra.s32 %s450_s9, 4  ;;  %s845_s20 = scalar_lea.hbm %s1177_s6, 16  ;;  %s840_s22 = int_to_ptr.hbm [resolvable:$true] %s839_s22 }
 0x122   : > { %s841_s13 = scalar_lea.hbm %s840_s22, 8  ;;  %p846_p7 = scmp.lt.s32.totalorder %s840_s22, %s1177_s6 }
 0x123   : > { %p842_p2 = scmp.ne.s32.totalorder %s840_s22, %s841_s13  ;;  %p847_p8 = scmp.lt.s32.totalorder %s845_s20, %s841_s13 }
 0x125   : > { %p843_p3 = pnand %p842_p2, %p1016_p5  ;;  %p848_p9 = por %p847_p8, %p846_p7 }
 0x127   : > { %p844_p4 = pneg %p843_p3 }
 0x129   : > { %p849_p10 = pnand %p848_p9, %p844_p4 }
 0x12b   : > { %852 = shalt.err (!%p849_p10)
}
 0x12c   : > { %672 = dma.vmem_to_hbm [thread:$0]  (%p1016_p5), %s448_s29, 128, %s450_s9, %s397_s17   ;;  %v388_v14 = vpop.permute.xlu1 %387 }
 0x12d   : > { %390 = vst.msk [vmem:[%s327_s28] sm:$0xff] %vm381_vm1, %v388_v14  ;;  %s407_s3 = scalar_lea.sflag [#allocation10], %s1046_s15  ;;  %s867_s8 = sshra.s32 %s464_s0, 4  ;;  %s868_s8 = int_to_ptr.hbm [resolvable:$true] %s867_s8 }
 0x12e   : > { %s869_s23 = scalar_lea.hbm %s868_s8, 8  ;;  %s873_s13 = scalar_lea.hbm %s1178_s7, 16 }
 0x12f   : > { %p870_p11 = scmp.ne.s32.totalorder %s868_s8, %s869_s23  ;;  %p874_p0 = scmp.lt.s32.totalorder %s868_s8, %s1178_s7 }
 0x130   : > { %p875_p1 = scmp.lt.s32.totalorder %s873_s13, %s869_s23 }
 0x131   : > { %p871_p12 = pnand %p870_p11, %p1016_p5 }
 0x132   : > { %p876_p2 = por %p875_p1, %p874_p0 }
 0x133   : > { %p872_p13 = pneg %p871_p12 }
 0x135   : > { %p877_p3 = pnand %p876_p2, %p872_p13 }
 0x137   : > { %880 = shalt.err (!%p877_p3)
}
 0x138   : > { %673 = dma.vmem_to_hbm [thread:$0]  (%p1016_p5), %s462_s14, 128, %s464_s0, %s407_s3  }
 0x139 PF: > { %p697_p4 = scmp.ge.s32.totalorder %s927_s27, 2  ;;  %s475_s15 = sand.u32 1, %s915_s24  }
 0x13a   : > { %s476_s18 = scalar_lea.sflag [#allocation4], %s475_s15 }
 0x13b   : > { %p683_p7 = pnand %p697_p4, %p1020_p6 }
 0x13d   : > { %p684_p8 = pneg %p683_p7 }
 0x13f   : > { %902 = dma.done.wait (%p684_p8), %s476_s18, 128  }
 0x140   : > { %904 = vsyncadd (%p684_p8), %s476_s18, 4294967168  ;;  %s1190_s9 = sadd.s32 4294967294, %s927_s27  }
 0x141   : > { %s485_s28 = sand.u32 1, %s1190_s9  }
 0x142   : > { %s486_s17 = scalar_lea.sflag [#allocation7], %s485_s28 }
 0x143   : > { %906 = dma.done.wait (%p684_p8), %s486_s17, 256  }
 0x144   : > { %908 = vsyncadd (%p684_p8), %s486_s17, 4294967040  ;;  %s506_s11 = scalar_lea.sflag [#allocation10], %s475_s15 }
 0x145   : > { %910 = dma.done.wait (%p684_p8), %s506_s11, 128  }
 0x146   : > { %912 = vsyncadd (%p684_p8), %s506_s11, 4294967168  ;;  %p25_p5 = scmp.ge.s32.totalorder %s1001_s30, 4   ;;  %s1191_s24 = smov %s919_s25 }
 0x147   : > { %s1192_s25 = smov %s923_s26  ;;  %s1193_s26 = smov %s1014_s10 }
 0x148   : > { %s1194_s27 = smov %s1001_s30  ;;  %27 = sbr.rel (!%p25_p5) target bundleno = 13 (0xd), region = 128 }
 0x14d   :  { %512 = vsyncpa [#allocation3], 1 }
 0x14e   :  { %514 = vsyncpa [#allocation3 + $0x1], 1 }
 0x14f   :  { %515 = vsyncpa [#allocation4], 1 }
 0x150   :  { %517 = vsyncpa [#allocation4 + $0x1], 1 }
 0x151   :  { %518 = vsyncpa [#allocation7], 1 }
 0x152   :  { %520 = vsyncpa [#allocation7 + $0x1], 1 }
 0x153   :  { %521 = vsyncpa [#allocation10], 1 }
 0x154   :  { %523 = vsyncpa [#allocation10 + $0x1], 1 }

</bundles_post_ra>
